<compile_context>
chip_gen: v6e
topology: v6e:2x2x1
jax: 0.10.0
libtpu: 0.0.40
codegen_flags: <defaults>
</compile_context>

<pallas_src>
import functools

import jax
import jax.numpy as jnp
from jax import lax
from jax.experimental import pallas as pl
from jax.experimental.pallas import tpu as pltpu

_LANES = 128
_SUBLANES = 8


def _charbonnier_kernel(*refs, eps, block_rows, valid_rows_last, has_mask,
                        needs_tail_mask):
    if has_mask:
        x_ref, y_ref, m_ref, o_ref = refs
    else:
        x_ref, y_ref, o_ref = refs
        m_ref = None

    def _compute(masked):
        # Upcast in-kernel (VPU) so low-precision inputs keep their native
        # (halved) HBM footprint.
        d = x_ref[...].astype(jnp.float32) - y_ref[...].astype(jnp.float32)
        if masked:
            # Block-local row index vs a STATIC valid-row count: no global
            # int32 index, and the diff is zeroed before sqrt so the stale
            # overhang of the partial last block never produces NaN/Inf.
            row_ids = lax.broadcasted_iota(jnp.int32, (block_rows, _LANES), 0)
            valid = row_ids < valid_rows_last
            d = jnp.where(valid, d, 0.0)
        val = jnp.sqrt(d * d + eps)
        if has_mask:
            m = m_ref[...].astype(jnp.float32)
            if masked:
                m = jnp.where(valid, m, 0.0)
            val = val * m
        elif masked:
            val = jnp.where(valid, val, 0.0)
        # Partial reduction to one vreg-shaped (8,128) slab: pure VPU adds per
        # step; the cross-lane/sublane reduce happens once, outside the kernel.
        o_ref[...] = val.reshape(block_rows // _SUBLANES, _SUBLANES,
                                 _LANES).sum(axis=0, keepdims=True)

    if needs_tail_mask:
        last = pl.num_programs(0) - 1

        @pl.when(pl.program_id(0) != last)
        def _():
            _compute(masked=False)        # steady-state: no mask overhead

        @pl.when(pl.program_id(0) == last)
        def _():
            _compute(masked=True)         # only the last block pays the mask
    else:
        _compute(masked=False)


def charbonnier_loss(x, y, mask=None, eps=1e-6, mode=None, block_rows=8192):
    """Charbonnier loss matching the PyTorch module:

        diff = x - y
        loss = sqrt(diff*diff + eps)
        if mask is not None: loss = loss * mask
        return sum(loss)/x.shape[1] if mode == 'sum' else mean(loss)
    """
    assert x.shape == y.shape, (x.shape, y.shape)
    n_channels = x.shape[1] if x.ndim > 1 else 1
    total = int(x.size)

    x_flat = x.reshape(-1)
    y_flat = y.reshape(-1)

    has_mask = mask is not None
    m_flat = None
    if has_mask:
        # Only materialize a broadcast if the mask is not already full-shaped.
        # TODO(synk): stream small broadcastable masks via their own BlockSpec
        # instead of materializing the broadcast.
        m_full = mask if mask.shape == x.shape else jnp.broadcast_to(mask, x.shape)
        m_flat = m_full.reshape(-1)
        if m_flat.dtype == jnp.bool_:
            m_flat = m_flat.astype(jnp.bfloat16)      # exact for 0/1, 2B/elem
        elif not jnp.issubdtype(m_flat.dtype, jnp.floating):
            m_flat = m_flat.astype(jnp.float32)

    rows = total // _LANES
    bulk = rows * _LANES
    tail = total - bulk

    # Tiny (<128-elem) ragged tail in pure JAX.
    tail_sum = jnp.float32(0.0)
    if tail:
        xt = x_flat[bulk:].astype(jnp.float32)
        yt = y_flat[bulk:].astype(jnp.float32)
        dt = xt - yt
        vt = jnp.sqrt(dt * dt + float(eps))
        if has_mask:
            vt = vt * m_flat[bulk:].astype(jnp.float32)
        tail_sum = jnp.sum(vt)

    if rows == 0:
        total_sum = tail_sum
    else:
        if tail:
            arrays = [x_flat[:bulk], y_flat[:bulk]]
            if has_mask:
                arrays.append(m_flat[:bulk])
        else:
            arrays = [x_flat, y_flat]
            if has_mask:
                arrays.append(m_flat)
        arrays = [a.reshape(rows, _LANES) for a in arrays]

        # Sublane multiple depends on the narrowest streamed dtype
        # (f32 -> 8, bf16/f16 -> 16, int8 -> 32).
        min_sub = _SUBLANES
        for a in arrays:
            bits = jnp.dtype(a.dtype).itemsize * 8
            min_sub = max(min_sub, _SUBLANES * 32 // bits)

        # Big blocks, but keep double-buffered input streams <= ~24 MiB so we
        # fit comfortably everywhere (v7x has only 64 MiB physical VMEM).
        bytes_per_row_db = 2 * _LANES * sum(
            jnp.dtype(a.dtype).itemsize for a in arrays)
        vmem_budget = 24 * 1024 * 1024
        br = min(int(block_rows), max(min_sub, vmem_budget // bytes_per_row_db))
        rows_rounded = -(-rows // min_sub) * min_sub
        br = min(br, rows_rounded)
        br = max(min_sub, (br // min_sub) * min_sub)

        grid = -(-rows // br)
        valid_rows_last = rows - (grid - 1) * br      # static Python int
        needs_tail_mask = valid_rows_last != br       # static decision

        kernel = functools.partial(
            _charbonnier_kernel,
            eps=float(eps),
            block_rows=br,
            valid_rows_last=int(valid_rows_last),
            has_mask=has_mask,
            needs_tail_mask=bool(needs_tail_mask),
        )

        in_spec = pl.BlockSpec((br, _LANES), lambda i: (i, 0))
        partials = pl.pallas_call(
            kernel,
            out_shape=jax.ShapeDtypeStruct((grid, _SUBLANES, _LANES),
                                           jnp.float32),
            grid_spec=pltpu.PrefetchScalarGridSpec(
                num_scalar_prefetch=0,
                grid=(grid,),
                in_specs=[in_spec] * len(arrays),
                out_specs=pl.BlockSpec((1, _SUBLANES, _LANES),
                                       lambda i: (i, 0, 0)),
            ),
            compiler_params=pltpu.CompilerParams(
                dimension_semantics=("parallel",),
                vmem_limit_bytes=40 * 1024 * 1024,
            ),
        )(*arrays)

        total_sum = jnp.sum(partials) + tail_sum

    if mode == "sum":
        return total_sum / jnp.float32(n_channels)
    return total_sum / jnp.float32(total)


def _reference(x, y, mask=None, eps=1e-6, mode=None):
    n = x.shape[1]
    diff = x.astype(jnp.float32) - y.astype(jnp.float32)
    loss = jnp.sqrt(diff * diff + eps)
    if mask is not None:
        loss = loss * mask.astype(jnp.float32)
    if mode == "sum":
        return jnp.sum(loss) / n
    return jnp.mean(loss)


if __name__ == "__main__":
    key = jax.random.PRNGKey(0)
    kx, ky, km = jax.random.split(key, 3)

    B, C, H, W = 2, 4, 16, 16
    x = jax.random.normal(kx, (B, C, H, W), dtype=jnp.float32)
    y = jax.random.normal(ky, (B, C, H, W), dtype=jnp.float32)
    mask = (jax.random.uniform(km, (B, C, H, W)) > 0.3).astype(jnp.float32)

    # default mode (mean), no mask -> 2-stream kernel, aligned, single block
    out = charbonnier_loss(x, y)
    jax.block_until_ready(out)
    ref = _reference(x, y)
    assert jnp.allclose(out, ref, rtol=1e-5, atol=1e-6), (out, ref)

    # 'sum' mode with full-shape f32 mask -> 3-stream kernel
    out_s = charbonnier_loss(x, y, mask=mask, mode="sum")
    jax.block_until_ready(out_s)
    ref_s = _reference(x, y, mask=mask, mode="sum")
    assert jnp.allclose(out_s, ref_s, rtol=1e-5, atol=1e-5), (out_s, ref_s)

    # ragged total (not a multiple of 128) -> pure-JAX tail + masked last block
    xr = jax.random.normal(kx, (2, 3, 7, 5), dtype=jnp.float32)
    yr = jax.random.normal(ky, (2, 3, 7, 5), dtype=jnp.float32)
    out_r = charbonnier_loss(xr, yr)
    jax.block_until_ready(out_r)
    ref_r = _reference(xr, yr)
    assert jnp.allclose(out_r, ref_r, rtol=1e-5, atol=1e-6), (out_r, ref_r)

    # 128-aligned but partial last block (rows not a multiple of block rows)
    xp = jax.random.normal(kx, (2, 3, 20, 16), dtype=jnp.float32)
    yp = jax.random.normal(ky, (2, 3, 20, 16), dtype=jnp.float32)
    out_p = charbonnier_loss(xp, yp)
    jax.block_until_ready(out_p)
    ref_p = _reference(xp, yp)
    assert jnp.allclose(out_p, ref_p, rtol=1e-5, atol=1e-6), (out_p, ref_p)

    # multi-block grid (forced small block_rows) exercising pl.when gating
    out_g = charbonnier_loss(xp, yp, block_rows=8)
    jax.block_until_ready(out_g)
    assert jnp.allclose(out_g, ref_p, rtol=1e-5, atol=1e-6), (out_g, ref_p)

    # bf16 inputs stay bf16 in HBM; upcast to f32 happens inside the kernel
    xb = x.astype(jnp.bfloat16)
    yb = y.astype(jnp.bfloat16)
    out_b = charbonnier_loss(xb, yb)
    jax.block_until_ready(out_b)
    ref_b = _reference(xb, yb)
    assert jnp.allclose(out_b, ref_b, rtol=1e-3, atol=1e-4), (out_b, ref_b)

    print("KERNEL_OK")
</pallas_src>

<mosaic_0001>
module attributes {stable_mosaic.version = 11 : i64} {
  func.func @_charbonnier_kernel(%arg0: i32, %arg1: memref<16x128xf32, #tpu.memory_space<vmem>>, %arg2: memref<16x128xf32, #tpu.memory_space<vmem>>, %arg3: memref<1x8x128xf32, #tpu.memory_space<vmem>>) attributes {dimension_semantics = [#tpu.dimension_semantics<parallel>], iteration_bounds = array<i64: 1>, scalar_prefetch = 0 : i64, scratch_operands = 0 : i64, tpu.core_type = #tpu.core_type<tc>, window_params = [{transform_indices = @transform_0, window_bounds = array<i64: 16, 128>}, {transform_indices = @transform_1, window_bounds = array<i64: 16, 128>}, {transform_indices = @transform_2, window_bounds = array<i64: 1, 8, 128>}]} {
    %c0 = arith.constant 0 : index
    %c0_0 = arith.constant 0 : index
    %0 = vector.load %arg1[%c0, %c0_0] : memref<16x128xf32, #tpu.memory_space<vmem>>, vector<16x128xf32>
    %c0_1 = arith.constant 0 : index
    %c0_2 = arith.constant 0 : index
    %1 = vector.load %arg2[%c0_1, %c0_2] : memref<16x128xf32, #tpu.memory_space<vmem>>, vector<16x128xf32>
    %2 = arith.subf %0, %1 : vector<16x128xf32>
    %3 = arith.mulf %2, %2 : vector<16x128xf32>
    %cst = arith.constant 9.99999997E-7 : f32
    %4 = vector.broadcast %cst : f32 to vector<16x128xf32>
    %5 = arith.addf %3, %4 : vector<16x128xf32>
    %6 = math.sqrt %5 : vector<16x128xf32>
    %7 = vector.shape_cast %6 : vector<16x128xf32> to vector<2x8x128xf32>
    %cst_3 = arith.constant dense<0.000000e+00> : vector<8x128xf32>
    %8 = vector.multi_reduction <add>, %7, %cst_3 [0] : vector<2x8x128xf32> to vector<8x128xf32>
    %9 = vector.shape_cast %8 : vector<8x128xf32> to vector<1x8x128xf32>
    %c0_4 = arith.constant 0 : index
    %c0_5 = arith.constant 0 : index
    %c0_6 = arith.constant 0 : index
    %10 = vector.load %arg3[%c0_4, %c0_5, %c0_6] : memref<1x8x128xf32, #tpu.memory_space<vmem>>, vector<1x8x128xf32>
    tpu.vector_store %arg3[%c0_4, %c0_5, %c0_6], %9 {strides = array<i32>} : memref<1x8x128xf32, #tpu.memory_space<vmem>>, vector<1x8x128xf32>,
    return
  }
  func.func @transform_0(%arg0: i32) -> (i32, i32) {
    %c0_i32 = arith.constant 0 : i32
    %c0_i32_0 = arith.constant 0 : i32
    return %arg0, %c0_i32 : i32, i32
  }
  func.func @transform_1(%arg0: i32) -> (i32, i32) {
    %c0_i32 = arith.constant 0 : i32
    %c0_i32_0 = arith.constant 0 : i32
    return %arg0, %c0_i32 : i32, i32
  }
  func.func @transform_2(%arg0: i32) -> (i32, i32, i32) {
    %c0_i32 = arith.constant 0 : i32
    %c0_i32_0 = arith.constant 0 : i32
    %c0_i32_1 = arith.constant 0 : i32
    return %arg0, %c0_i32, %c0_i32_0 : i32, i32, i32
  }
}

</mosaic_0001>

<bundles_post_ra>
// kernel: tpu_custom_call.1
= control target key start
LH: loop header
LB: loop body
LE: loop exit
PB: predicated region body
PF: predicated region fallthrough
CT: control target
= control target key end

     0   :  { %7 = vsyncpa [#allocation3], 0  ;;  %s186_s0 = inlined_call_operand.hbm [shape: f32[16,128], index: 0, kind: input, shape index: {}]   ;;  %s187_s1 = inlined_call_operand.hbm [shape: f32[16,128], index: 1, kind: input, shape index: {}]   ;;  %s188_s2 = inlined_call_operand.hbm [shape: f32[1,8,128], index: 2, kind: output, shape index: {}]  }
   0x1   :  { %8 = vsyncpa [#allocation6], 0 }
   0x2   :  { %9 = vsyncpa [#allocation4], 0  ;;  %s157_s9 = smov [#allocation2]  }
   0x3   :  { %s15_s10 = sshll.u32 %s157_s9, 4  ;;  %s16_s10 = int_to_ptr.vmem [resolvable:$true] %s15_s10 }
   0x4   :  { %s99_s11 = scalar_lea.vmem %s16_s10, 256  ;;  %p104_p1 = scmp.lt.s32.totalorder %s16_s10, %s16_s10 }
   0x5   :  { %p100_p0 = scmp.ne.s32.totalorder %s16_s10, %s99_s11  ;;  %p105_p2 = scmp.lt.s32.totalorder %s99_s11, %s99_s11 }
   0x7   :  { %p106_p3 = por %p105_p2, %p104_p1 }
   0x9   :  { %p107_p4 = pnand %p106_p3, %p100_p0 }
   0xb   :  { %110 = shalt.err (!%p107_p4)
}
   0xc   :  { %s158_s12 = smov 128   ;;  %s159_s13 = smov 8  }
   0xd   :  { %21 = dma.hbm_to_vmem [thread:$0]  %s186_s0, 256, %s16_s10, [#allocation3], %s158_s12, %s158_s12, %s159_s13  }
   0xe   :  { %s160_s16 = smov [#allocation5]  }
   0xf   :  { %s27_s17 = sshll.u32 %s160_s16, 4  ;;  %s28_s17 = int_to_ptr.vmem [resolvable:$true] %s27_s17 }
  0x10   :  { %s119_s18 = scalar_lea.vmem %s28_s17, 256  ;;  %p124_p6 = scmp.lt.s32.totalorder %s28_s17, %s28_s17 }
  0x11   :  { %p120_p5 = scmp.ne.s32.totalorder %s28_s17, %s119_s18  ;;  %p125_p7 = scmp.lt.s32.totalorder %s119_s18, %s119_s18 }
  0x13   :  { %p126_p8 = por %p125_p7, %p124_p6 }
  0x15   :  { %p127_p9 = pnand %p126_p8, %p120_p5 }
  0x17   :  { %130 = shalt.err (!%p127_p9)
}
  0x18   :  { %33 = dma.hbm_to_vmem [thread:$0]  %s187_s1, 256, %s28_s17, [#allocation6], %s158_s12, %s158_s12, %s159_s13  }
  0x19   :  { %151 = dma.done.wait [#allocation3], 256  }
  0x1a   :  { %152 = vsyncadd [#allocation3], 4294967040 }
  0x1b   :  { %153 = dma.done.wait [#allocation6], 256  }
  0x1c   :  { %154 = vsyncadd [#allocation6], 4294967040  ;;  %v40_v0 = vld [vmem:[#allocation2] sm:$0xff]  ;;  %v41_v1 = vld [vmem:[#allocation2 + $0x8] sm:$0xff]  ;;  %s161_s0 = smov [#allocation7]  }
  0x1d   :  { %v42_v2 = vld [vmem:[#allocation5] sm:$0xff]  ;;  %v43_v3 = vld [vmem:[#allocation5 + $0x8] sm:$0xff]  ;;  %s72_s1 = sshll.u32 %s161_s0, 4  ;;  %s73_s1 = int_to_ptr.vmem [resolvable:$true] %s72_s1 }
  0x1e   :  { %v44_v4 = vsub.f32 %v40_v0, %v42_v2  ;;  %v45_v5 = vsub.f32 %v41_v1, %v43_v3  ;;  %s131_s21 = scalar_lea.vmem %s73_s1, 128  ;;  %p136_p11 = scmp.lt.s32.totalorder %s73_s1, %s73_s1 }
  0x1f   :  { %p132_p10 = scmp.ne.s32.totalorder %s73_s1, %s131_s21  ;;  %p137_p12 = scmp.lt.s32.totalorder %s131_s21, %s131_s21 }
  0x20   :  { %v46_v6 = vmul.f32 %v44_v4, %v44_v4  ;;  %v47_v7 = vmul.f32 %v45_v5, %v45_v5 }
  0x21   :  { %p138_p13 = por %p137_p12, %p136_p11 }
  0x22   :  { %v48_v8 = vadd.f32 1e-06, %v46_v6  ;;  %v49_v9 = vadd.f32 1e-06, %v47_v7 }
  0x23   :  { %p139_p0 = pnand %p138_p13, %p132_p10 }
  0x24   :  { %87 = vrsqrt.f32 %v48_v8  ;;  %vm52_vm0 = vcmp.eq.f32.partialorder %v48_v8, inf  ;;  %v55_v11 = vand.u32 2147483648, %v48_v8  ;;  %vm54_vm1 = vcmp.eq.f32.partialorder %v48_v8, 0.0 }
  0x25   :  { %89 = vrsqrt.f32 %v49_v9  ;;  %vm59_vm2 = vcmp.eq.f32.partialorder %v49_v9, inf  ;;  %v62_v14 = vand.u32 2147483648, %v49_v9  ;;  %vm61_vm3 = vcmp.eq.f32.partialorder %v49_v9, 0.0 }
  0x31   :  { %v88_v10 = vpop.eup %87 }
  0x32   :  { %v90_v12 = vpop.eup %89  ;;  %v51_v13 = vmul.f32 %v88_v10, %v48_v8 }
  0x33   :  { %v58_v15 = vmul.f32 %v90_v12, %v49_v9 }
  0x34   :  { %v53_v16 = vsel %vm52_vm0, %v48_v8, %v51_v13 }
  0x35   :  { %v56_v17 = vsel %vm54_vm1, %v55_v11, %v53_v16  ;;  %v60_v18 = vsel %vm59_vm2, %v49_v9, %v58_v15 }
  0x36   :  { %v63_v19 = vsel %vm61_vm3, %v62_v14, %v60_v18 }
  0x37   :  { %v64_v20 = vadd.f32 %v63_v19, %v56_v17 }
  0x39   :  { %65 = vst [vmem:[#allocation7] sm:$0xff] %v64_v20 }
  0x3a   :  { %142 = shalt.err (!%p139_p0)
}
  0x3b   :  { %75 = dma.vmem_to_hbm [thread:$0]  %s73_s1, 128, %s188_s2, [#allocation4]  }
  0x3c   :  { %155 = dma.done.wait [#allocation4], 128  }
  0x3d   :  { %156 = vsyncadd [#allocation4], 4294967168 }
  0x3e   :  { %79 = vsyncpa [#allocation3], 1 }
  0x3f   :  { %80 = vsyncpa [#allocation6], 1 }
  0x40   :  { %81 = vsyncpa [#allocation4], 1 }

</bundles_post_ra>
